<compile_context>
chip_gen: v7x
topology: tpu7x:2x2x1
jax: 0.10.0
libtpu: 0.0.40
codegen_flags: <defaults>
</compile_context>

<pallas_src>
import numpy as np
import jax
import jax.numpy as jnp
from jax.experimental import pallas as pl
from jax.experimental.pallas import tpu as pltpu


def spiking_body_predict_kernel(spike_ref, pred_ref, acc_ref):
    """spike_ref: (b_tile, N, t_tile) narrow-dtype VMEM tile.
    pred_ref:  (b_tile, 1) f32 output block (resident across the time grid axis).
    acc_ref:   (b_tile, N) f32 partial time-sums (tiny scratch)."""
    t_blk = pl.program_id(1)

    @pl.when(t_blk == 0)
    def _init():
        acc_ref[...] = jnp.zeros_like(acc_ref)

    # Widen in-register (VPU) + one lane reduce over the time tile (XLU).
    # Exact for integer spike counts up to 2^24 per (b, n) position.
    acc_ref[...] += jnp.sum(spike_ref[...].astype(jnp.float32), axis=-1)

    @pl.when(t_blk == pl.num_programs(1) - 1)
    def _finalize():
        sums = acc_ref[...]                                   # (b_tile, N)
        n = sums.shape[-1]
        max_val = jnp.max(sums, axis=-1, keepdims=True)       # (b_tile, 1)
        # First-occurrence argmax (matches torch.argmax) via int iota + min.
        idx = jax.lax.broadcasted_iota(jnp.int32, sums.shape, dimension=1)
        cand = jnp.where(sums == max_val, idx, jnp.int32(n))
        argmax_i = jnp.min(cand, axis=-1, keepdims=True)      # (b_tile, 1) int32
        # torch's r.any() == any(rate != 0) == any(sum != 0) == max(|sum|) > 0,
        # which is exact even for negative spike values.
        active = jnp.max(jnp.abs(sums), axis=-1, keepdims=True) > 0.0
        pred = jnp.where(active, argmax_i.astype(jnp.float32) + 1.0,
                         jnp.float32(0.0))
        pred_ref[...] = pred.astype(pred_ref.dtype)


def spiking_body_classifier(spike, *, max_block_bytes=None):
    """Pallas implementation of SpikingBodyClassifier.forward (== predict).

    spike: (B, *spatial, T) array (any real dtype; bool accepted).
    Returns (B,) float32 predictions (0 = no activity, else argmax(rate) + 1).
    """
    B = int(spike.shape[0])
    T = int(spike.shape[-1])
    N = int(np.prod(spike.shape[1:-1])) if spike.ndim > 2 else 1

    x = jnp.asarray(spike)
    if x.dtype == jnp.bool_:
        # TODO(synk): stream bool straight through (widen in-kernel) once i1 VMEM
        # tiles are reliable; JAX forbids bool bitcasts, so bool callers pay one
        # extra HBM copy.  Numeric dtypes stream in their native width, no copy.
        x = x.astype(jnp.int8)
    x = x.reshape(B, N, T)
    itemsize = x.dtype.itemsize

    def _ceil(a, m):
        return -(-a // m) * m

    # ---- per-generation VMEM budget ----
    try:
        vmem_cap = int(getattr(pltpu.get_tpu_info(), "vmem_capacity_bytes",
                               64 * 2**20))
    except Exception:
        vmem_cap = 64 * 2**20
    # v7x: 64 MiB physical -> stay well under; v5e/v6e: 128 MiB -> allow bigger tiles.
    vmem_budget = 40 * 2**20 if vmem_cap <= 64 * 2**20 else 80 * 2**20
    target_block_bytes = max_block_bytes or max(1 << 20, vmem_budget // 5)

    # ---- batch tile: multiple of 8 (for the (b_tile, 1) output block) or full B ----
    if B > 16 and B % 8 != 0:
        B_pad = _ceil(B, 8)                 # pad large unaligned batches
    else:
        B_pad = B
    if B_pad % 8 == 0 and B_pad >= 16:
        b_tile = 8                          # >= 2 parallel blocks -> both v7x TCs busy
    else:
        b_tile = B_pad                      # small batch: single whole-batch block
        # TODO(synk): for tiny B on v7x, add a parallel split over N/time with a
        #             partial-sum combine so the second TensorCore is used.

    # ---- time tile: the streamed, contiguous minor axis ----
    sub_in = 8 * max(1, 4 // itemsize)      # native sublane tile of the input dtype
    n_vmem = _ceil(N, sub_in)               # N as laid out in VMEM tiles
    row_bytes = max(1, b_tile * n_vmem * itemsize)   # VMEM bytes per time step/block
    if T <= 128 or T * row_bytes <= target_block_bytes:
        t_tile, T_pad = T, T                # whole time axis in one block (exempt)
    else:
        t_tile = max(128, (target_block_bytes // row_bytes) // 128 * 128)
        t_tile = min(t_tile, (T // 128) * 128)
        T_pad = _ceil(T, t_tile)            # zero-pad: exact for sums/argmax/any

    # If the time axis fits whole and batch blocks are plentiful, trade surplus
    # blocks for bigger ones (keep >= 2 so v7x megacore still splits the batch).
    while (t_tile == T_pad
           and B_pad % (2 * b_tile) == 0
           and B_pad // (2 * b_tile) >= 2
           and 2 * b_tile * n_vmem * T_pad * itemsize <= target_block_bytes):
        b_tile *= 2
    # TODO(synk): tile N as well if a single (b_tile, N, 128) block or the
    #             (b_tile, N) f32 accumulator exceeds the VMEM budget.

    if B_pad != B or T_pad != T:
        x = jnp.pad(x, ((0, B_pad - B), (0, 0), (0, T_pad - T)))

    n_t_blocks = T_pad // t_tile
    grid = (B_pad // b_tile, n_t_blocks)

    # ---- VMEM accounting (native tile padding included) for the Mosaic limit ----
    n_buf = 3 if n_t_blocks >= 3 else 2
    in_bytes = n_buf * b_tile * n_vmem * _ceil(t_tile, 128) * itemsize
    acc_bytes = _ceil(b_tile, 8) * _ceil(N, 128) * 4
    out_bytes = 2 * _ceil(b_tile, 8) * 128 * 4
    vmem_limit = int(min(vmem_budget,
                         max(in_bytes + acc_bytes + out_bytes + (4 << 20),
                             16 << 20)))

    idx_in = lambda b, t: (b, 0, t)
    in_spec = pl.BlockSpec((b_tile, N, t_tile), idx_in)
    if n_t_blocks >= 3:
        # Per-tile compute is only a widen + lane reduce, so a 3-deep input
        # pipeline hides DMA ramp at block boundaries (cheap: one extra block).
        try:
            in_spec = pl.BlockSpec((b_tile, N, t_tile), idx_in,
                                   pipeline_mode=pl.Buffered(3))
        except TypeError:
            pass  # fall back to default double buffering

    pred = pl.pallas_call(
        spiking_body_predict_kernel,
        out_shape=jax.ShapeDtypeStruct((B_pad, 1), jnp.float32),
        grid_spec=pltpu.PrefetchScalarGridSpec(
            num_scalar_prefetch=0,
            grid=grid,
            in_specs=[in_spec],
            out_specs=pl.BlockSpec((b_tile, 1), lambda b, t: (b, 0)),
            scratch_shapes=[pltpu.VMEM((b_tile, N), jnp.float32)]),
        compiler_params=pltpu.CompilerParams(
            dimension_semantics=("parallel", "arbitrary"),
            vmem_limit_bytes=vmem_limit),
        cost_estimate=pl.CostEstimate(
            flops=int(B_pad * N * T_pad),
            transcendentals=0,
            bytes_accessed=int(B_pad * N * T_pad * itemsize + B_pad * 4)),
    )(x)
    return pred.reshape(B_pad)[:B]


def _reference_predict(spike_np):
    """Pure-numpy reference matching the PyTorch module exactly."""
    rate = np.asarray(spike_np, dtype=np.float64).mean(axis=-1)   # (B, *spatial)
    B = rate.shape[0]
    pred = np.zeros(B, dtype=np.float32)
    for i in range(B):
        r = rate[i]
        if bool(r.any()):                   # torch: r.any() > 0.05 <=> any nonzero
            pred[i] = np.argmax(r.reshape(-1)) + 1
    return pred


if __name__ == "__main__":
    key = jax.random.PRNGKey(0)
    k1, k2, k3, k4 = jax.random.split(key, 4)

    # Case 1: int8 spike train (B, C, S, T), whole-T block; row 1 has no activity.
    B, C, S, T = 2, 4, 4, 1024
    spikes = jax.random.bernoulli(k1, p=0.1, shape=(B, C, S, T)).astype(jnp.int8)
    spikes = spikes.at[1].set(0)
    out = jax.block_until_ready(spiking_body_classifier(spikes))
    np.testing.assert_array_equal(np.asarray(out),
                                  _reference_predict(np.asarray(spikes)))

    # Case 2: float spikes with odd B / odd T (whole-axis blocks, no padding).
    spikes2 = 0.5 * jax.random.bernoulli(k2, p=0.2,
                                         shape=(3, 10, 96)).astype(jnp.float32)
    out2 = jax.block_until_ready(spiking_body_classifier(spikes2))
    np.testing.assert_array_equal(np.asarray(out2),
                                  _reference_predict(np.asarray(spikes2)))

    # Case 3: force small blocks -> tiled + zero-padded time axis (T=1000 -> 1024),
    # multi-step accumulation and the 3-deep input pipeline.
    spikes3 = jax.random.bernoulli(k3, p=0.05,
                                   shape=(2, 4, 4, 1000)).astype(jnp.int8)
    out3 = jax.block_until_ready(
        spiking_body_classifier(spikes3, max_block_bytes=8 * 1024))
    np.testing.assert_array_equal(np.asarray(out3),
                                  _reference_predict(np.asarray(spikes3)))

    # Case 4: negative float spikes (activity must be any(rate != 0), not
    # max(rate) > 0) plus an all-zero row.
    spikes4 = -0.5 * jax.random.bernoulli(k4, p=0.3,
                                          shape=(2, 6, 64)).astype(jnp.float32)
    spikes4 = spikes4.at[1].set(0.0)
    out4 = jax.block_until_ready(spiking_body_classifier(spikes4))
    np.testing.assert_array_equal(np.asarray(out4),
                                  _reference_predict(np.asarray(spikes4)))

    print("KERNEL_OK")
</pallas_src>

<mosaic_0001>
module attributes {stable_mosaic.version = 11 : i64} {
  func.func @spiking_body_predict_kernel(%arg0: i32, %arg1: i32, %arg2: memref<2x16x1024xi8, #tpu.memory_space<vmem>>, %arg3: memref<2x1xf32, #tpu.memory_space<vmem>>, %arg4: memref<2x16xf32, #tpu.memory_space<vmem>>) attributes {dimension_semantics = [#tpu.dimension_semantics<parallel>, #tpu.dimension_semantics<arbitrary>], iteration_bounds = array<i64: 1, 1>, scalar_prefetch = 0 : i64, scratch_operands = 1 : i64, tpu.core_type = #tpu.core_type<tc>, window_params = [{transform_indices = @transform_0, window_bounds = array<i64: 2, 16, 1024>}, {transform_indices = @transform_1, window_bounds = array<i64: 2, 1>}]} {
    %c0_i32 = arith.constant 0 : i32
    %0 = arith.cmpi eq, %arg1, %c0_i32 : i32
    %1 = arith.extui %0 : i1 to i32
    %c0_i32_0 = arith.constant 0 : i32
    %2 = arith.cmpi ne, %1, %c0_i32_0 : i32
    scf.if %2 {
      %cst_9 = arith.constant 0.000000e+00 : f32
      %12 = vector.broadcast %cst_9 : f32 to vector<2x16xf32>
      %c0_10 = arith.constant 0 : index
      %c0_11 = arith.constant 0 : index
      %13 = vector.load %arg4[%c0_10, %c0_11] : memref<2x16xf32, #tpu.memory_space<vmem>>, vector<2x16xf32>
      tpu.vector_store %arg4[%c0_10, %c0_11], %12 {strides = array<i32>} : memref<2x16xf32, #tpu.memory_space<vmem>>, vector<2x16xf32>,
    } else {
    }
    %c0 = arith.constant 0 : index
    %c0_1 = arith.constant 0 : index
    %3 = vector.load %arg4[%c0, %c0_1] : memref<2x16xf32, #tpu.memory_space<vmem>>, vector<2x16xf32>
    %c0_2 = arith.constant 0 : index
    %c0_3 = arith.constant 0 : index
    %c0_4 = arith.constant 0 : index
    %4 = vector.load %arg2[%c0_2, %c0_3, %c0_4] : memref<2x16x1024xi8, #tpu.memory_space<vmem>>, vector<2x16x1024xi8>
    %5 = arith.sitofp %4 : vector<2x16x1024xi8> to vector<2x16x1024xf32>
    %cst = arith.constant dense<0.000000e+00> : vector<2x16xf32>
    %6 = vector.multi_reduction <add>, %5, %cst [2] : vector<2x16x1024xf32> to vector<2x16xf32>
    %7 = arith.addf %3, %6 : vector<2x16xf32>
    %c0_5 = arith.constant 0 : index
    %c0_6 = arith.constant 0 : index
    %8 = vector.load %arg4[%c0_5, %c0_6] : memref<2x16xf32, #tpu.memory_space<vmem>>, vector<2x16xf32>
    tpu.vector_store %arg4[%c0_5, %c0_6], %7 {strides = array<i32>} : memref<2x16xf32, #tpu.memory_space<vmem>>, vector<2x16xf32>,
    %c0_i32_7 = arith.constant 0 : i32
    %9 = arith.cmpi eq, %arg1, %c0_i32_7 : i32
    %10 = arith.extui %9 : i1 to i32
    %c0_i32_8 = arith.constant 0 : i32
    %11 = arith.cmpi ne, %10, %c0_i32_8 : i32
    scf.if %11 {
      %c0_9 = arith.constant 0 : index
      %c0_10 = arith.constant 0 : index
      %12 = vector.load %arg4[%c0_9, %c0_10] : memref<2x16xf32, #tpu.memory_space<vmem>>, vector<2x16xf32>
      %cst_11 = arith.constant dense<0xFF800000> : vector<2xf32>
      %13 = vector.multi_reduction <maximumf>, %12, %cst_11 [1] : vector<2x16xf32> to vector<2xf32>
      %14 = vector.shape_cast %13 : vector<2xf32> to vector<2x1xf32>
      %15 = tpu.iota {dimensions = array<i32: 1>} : vector<2x16xi32>
      %16 = vector.broadcast %14 : vector<2x1xf32> to vector<2x16xf32>
      %17 = arith.cmpf oeq, %12, %16 : vector<2x16xf32>
      %c16_i32 = arith.constant 16 : i32
      %18 = vector.broadcast %c16_i32 : i32 to vector<2x16xi32>
      %19 = arith.select %17, %15, %18 : vector<2x16xi1>, vector<2x16xi32>
      %cst_12 = arith.constant dense<2147483647> : vector<2xi32>
      %20 = vector.multi_reduction <minsi>, %19, %cst_12 [1] : vector<2x16xi32> to vector<2xi32>
      %21 = vector.shape_cast %20 : vector<2xi32> to vector<2x1xi32>
      %22 = math.absf %12 : vector<2x16xf32>
      %cst_13 = arith.constant dense<0xFF800000> : vector<2xf32>
      %23 = vector.multi_reduction <maximumf>, %22, %cst_13 [1] : vector<2x16xf32> to vector<2xf32>
      %24 = vector.shape_cast %23 : vector<2xf32> to vector<2x1xf32>
      %cst_14 = arith.constant 0.000000e+00 : f32
      %25 = vector.broadcast %cst_14 : f32 to vector<2x1xf32>
      %26 = arith.cmpf ogt, %24, %25 : vector<2x1xf32>
      %27 = arith.sitofp %21 : vector<2x1xi32> to vector<2x1xf32>
      %cst_15 = arith.constant 1.000000e+00 : f32
      %28 = vector.broadcast %cst_15 : f32 to vector<2x1xf32>
      %29 = arith.addf %27, %28 : vector<2x1xf32>
      %cst_16 = arith.constant 0.000000e+00 : f32
      %30 = vector.broadcast %cst_16 : f32 to vector<2x1xf32>
      %31 = arith.select %26, %29, %30 : vector<2x1xi1>, vector<2x1xf32>
      %c0_17 = arith.constant 0 : index
      %c0_18 = arith.constant 0 : index
      %32 = vector.load %arg3[%c0_17, %c0_18] : memref<2x1xf32, #tpu.memory_space<vmem>>, vector<2x1xf32>
      tpu.vector_store %arg3[%c0_17, %c0_18], %31 {strides = array<i32>} : memref<2x1xf32, #tpu.memory_space<vmem>>, vector<2x1xf32>,
    } else {
    }
    return
  }
  func.func @transform_0(%arg0: i32, %arg1: i32) -> (i32, i32, i32) {
    %c0_i32 = arith.constant 0 : i32
    %c0_i32_0 = arith.constant 0 : i32
    return %arg0, %c0_i32, %arg1 : i32, i32, i32
  }
  func.func @transform_1(%arg0: i32, %arg1: i32) -> (i32, i32) {
    %c0_i32 = arith.constant 0 : i32
    %c0_i32_0 = arith.constant 0 : i32
    return %arg0, %c0_i32 : i32, i32
  }
}

</mosaic_0001>

<bundles_post_ra>
// kernel: tpu_custom_call.1
= control target key start
LH: loop header
LB: loop body
LE: loop exit
PB: predicated region body
PF: predicated region fallthrough
CT: control target
= control target key end

     0   :  { %6 = vsyncpa [#allocation4], 0  ;;  %s236_s6 = smov [#allocation3]   ;;  %s270_s0 = inlined_call_operand.hbm [shape: s8[2,16,1024], index: 0, kind: input, shape index: {}]   ;;  %s271_s1 = inlined_call_operand.vmem [shape: f32[2,1], index: 1, kind: output, shape index: {}]  }
   0x1   :  { %s12_s7 = sshll.u32 %s236_s6, 4  ;;  %s212_s10 = scalar_lea.hbm %s270_s0, 1024  ;;  %s13_s7 = int_to_ptr.vmem [resolvable:$true] %s12_s7 }
   0x2   :  { %p213_p0 = scmp.ne.s32.totalorder %s270_s0, %s212_s10  ;;  %p216_p1 = scmp.lt.u32.totalorder %s212_s10, %s270_s0 }
   0x4   :  { %p218_p2 = pnand %p216_p1, %p213_p0 }
   0x6   :  { %221 = shalt.err (!%p218_p2)
}
   0x7   :  { %s222_s15 = scalar_lea.vmem %s13_s7, 1024  ;;  %p227_p4 = scmp.lt.s32.totalorder %s13_s7, %s13_s7 }
   0x8   :  { %p223_p3 = scmp.ne.s32.totalorder %s13_s7, %s222_s15  ;;  %p228_p5 = scmp.lt.s32.totalorder %s222_s15, %s222_s15 }
   0xa   :  { %p229_p6 = por %p228_p5, %p227_p4 }
   0xc   :  { %p230_p7 = pnand %p229_p6, %p223_p3 }
   0xe   :  { %233 = shalt.err (!%p230_p7)
}
   0xf   :  { %s237_s16 = smov 256   ;;  %s238_s17 = smov 16  }
  0x10   :  { %18 = dma.hbm_to_vmem [thread:$0]  %s270_s0, 1024, %s13_s7, [#allocation4], %s237_s16, %s237_s16, %s238_s17  }
  0x11   :  { %234 = dma.done.wait [#allocation4], 1024  }
  0x12   :  { %235 = vsyncadd [#allocation4], 4294966272  ;;  %v33_v0 = vld [vmem:[#allocation3 + $0x20] sm:$0xff]  ;;  %v34_v1 = vld [vmem:[#allocation3 + $0x28] sm:$0xff]  ;;  %vm26_vm0 = vcmask 123904   ;;  %vm152_vm1 = vcmask 130112  }
  0x13   :  { %v53_v2 = vunpack.c.0.s8 %v33_v0  ;;  %v54_v3 = vunpack.c.1.s8 %v33_v0  ;;  %v55_v4 = vunpack.c.2.s8 %v33_v0  ;;  %v56_v5 = vunpack.c.3.s8 %v33_v0  ;;  %v29_v7 = vld [vmem:[#allocation3] sm:$0xff]  ;;  %v30_v13 = vld [vmem:[#allocation3 + $0x8] sm:$0xff]  ;;  %v35_v26 = vld [vmem:[#allocation3 + $0x30] sm:$0xff] }
  0x14   :  { %v57_v6 = vunpack.c.0.s8 %v34_v1  ;;  %v58_v11 = vunpack.c.1.s8 %v34_v1  ;;  %v37_v15 = vunpack.c.0.s8 %v29_v7  ;;  %v38_v16 = vunpack.c.1.s8 %v29_v7  ;;  %v36_v35 = vld [vmem:[#allocation3 + $0x38] sm:$0xff]  ;;  %v31_v48 = vld [vmem:[#allocation3 + $0x10] sm:$0xff] }
  0x15   :  { %v85_v8 = vcvt.s32.f32 %v53_v2  ;;  %v86_v9 = vcvt.s32.f32 %v54_v3  ;;  %v87_v10 = vcvt.s32.f32 %v55_v4  ;;  %v88_v12 = vcvt.s32.f32 %v56_v5  ;;  %v32_v63 = vld [vmem:[#allocation3 + $0x18] sm:$0xff] }
  0x16   :  { %v39_v17 = vunpack.c.2.s8 %v29_v7  ;;  %v59_v18 = vunpack.c.2.s8 %v34_v1  ;;  %v60_v19 = vunpack.c.3.s8 %v34_v1  ;;  %v89_v20 = vcvt.s32.f32 %v57_v6 }
  0x17   :  { %v119_v14 = vadd.f32 %v86_v9, %v85_v8  ;;  %v40_v21 = vunpack.c.3.s8 %v29_v7  ;;  %v41_v23 = vunpack.c.0.s8 %v30_v13  ;;  %v69_v24 = vcvt.s32.f32 %v37_v15 }
  0x18   :  { %v70_v25 = vcvt.s32.f32 %v38_v16  ;;  %v90_v27 = vcvt.s32.f32 %v58_v11  ;;  %v42_v28 = vunpack.c.1.s8 %v30_v13  ;;  %v43_v29 = vunpack.c.2.s8 %v30_v13 }
  0x19   :  { %v120_v22 = vadd.f32 %v119_v14, %v87_v10  ;;  %v71_v30 = vcvt.s32.f32 %v39_v17  ;;  %v44_v32 = vunpack.c.3.s8 %v30_v13  ;;  %v72_v33 = vcvt.s32.f32 %v40_v21 }
  0x1a   :  { %v101_v34 = vadd.f32 %v70_v25, %v69_v24  ;;  %v61_v36 = vunpack.c.0.s8 %v35_v26  ;;  %v62_v37 = vunpack.c.1.s8 %v35_v26  ;;  %v63_v38 = vunpack.c.2.s8 %v35_v26 }
  0x1b   :  { %v121_v31 = vadd.f32 %v120_v22, %v88_v12  ;;  %v64_v39 = vunpack.c.3.s8 %v35_v26  ;;  %v91_v40 = vcvt.s32.f32 %v59_v18  ;;  %v73_v42 = vcvt.s32.f32 %v41_v23 }
  0x1c   :  { %v102_v43 = vadd.f32 %v101_v34, %v71_v30  ;;  %v92_v44 = vcvt.s32.f32 %v60_v19  ;;  %v65_v45 = vunpack.c.0.s8 %v36_v35  ;;  %v93_v46 = vcvt.s32.f32 %v61_v36 }
  0x1d   :  { %v122_v41 = vadd.f32 %v121_v31, %v89_v20  ;;  %v94_v47 = vcvt.s32.f32 %v62_v37  ;;  %v74_v50 = vcvt.s32.f32 %v42_v28  ;;  %v95_v52 = vcvt.s32.f32 %v63_v38 }
  0x1e   :  { %v103_v51 = vadd.f32 %v102_v43, %v72_v33  ;;  %v75_v53 = vcvt.s32.f32 %v43_v29  ;;  %v76_v54 = vcvt.s32.f32 %v44_v32  ;;  %v66_v55 = vunpack.c.1.s8 %v36_v35 }
  0x1f   :  { %v123_v49 = vadd.f32 %v122_v41, %v90_v27  ;;  %v96_v56 = vcvt.s32.f32 %v64_v39  ;;  %v128_v59 = vadd.f32 %v94_v47, %v93_v46  ;;  %v45_v60 = vunpack.c.0.s8 %v31_v48 }
  0x20   :  { %v104_v58 = vadd.f32 %v103_v51, %v73_v42  ;;  %v67_v61 = vunpack.c.2.s8 %v36_v35  ;;  %v97_v62 = vcvt.s32.f32 %v65_v45  ;;  %v46_v0 = vunpack.c.1.s8 %v31_v48 }
  0x21   :  { %v124_v57 = vadd.f32 %v123_v49, %v91_v40  ;;  %v47_v1 = vunpack.c.2.s8 %v31_v48  ;;  %v129_v4 = vadd.f32 %v128_v59, %v95_v52  ;;  %v48_v5 = vunpack.c.3.s8 %v31_v48 }
  0x22   :  { %v105_v3 = vadd.f32 %v104_v58, %v74_v50  ;;  %v68_v6 = vunpack.c.3.s8 %v36_v35  ;;  %v98_v7 = vcvt.s32.f32 %v66_v55  ;;  %v77_v8 = vcvt.s32.f32 %v45_v60 }
  0x23   :  { %v125_v2 = vadd.f32 %v124_v57, %v92_v44  ;;  %v78_v9 = vcvt.s32.f32 %v46_v0  ;;  %v130_v11 = vadd.f32 %v129_v4, %v96_v56  ;;  %v49_v12 = vunpack.c.0.s8 %v32_v63 }
  0x24   :  { %v106_v10 = vadd.f32 %v105_v3, %v75_v53  ;;  %v79_v13 = vcvt.s32.f32 %v47_v1  ;;  %v99_v14 = vcvt.s32.f32 %v67_v61  ;;  %v50_v15 = vunpack.c.1.s8 %v32_v63 }
  0x25   :  { %126 = vadd.xlane.f32.xlu1 %v125_v2  ;;  %v131_v17 = vadd.f32 %v130_v11, %v97_v62  ;;  %v80_v18 = vcvt.s32.f32 %v48_v5  ;;  %v110_v19 = vadd.f32 %v78_v9, %v77_v8  ;;  %v100_v20 = vcvt.s32.f32 %v68_v6 }
  0x26   :  { %v107_v16 = vadd.f32 %v106_v10, %v76_v54  ;;  %v51_v22 = vunpack.c.2.s8 %v32_v63  ;;  %v81_v23 = vcvt.s32.f32 %v49_v12  ;;  %v52_v26 = vunpack.c.3.s8 %v32_v63 }
  0x27   :  { %v132_v21 = vadd.f32 %v131_v17, %v98_v7  ;;  %v111_v24 = vadd.f32 %v110_v19, %v79_v13  ;;  %v82_v27 = vcvt.s32.f32 %v50_v15  ;;  %v239_v36 = vmov 0.0  }
  0x28   :  { %108 = vadd.xlane.f32.xlu0 %v107_v16  ;;  %v83_v30 = vcvt.s32.f32 %v51_v22  ;;  %v84_v32 = vcvt.s32.f32 %v52_v26  ;;  %27 = vst.msk [vmem:[#allocation2] sm:$0x3] %vm26_vm0, %v239_v36  ;;  %v141_v37 = vlaneseq  ;;  %vm163_vm2 = vcmask 1041409  }
  0x29   :  { %v133_v25 = vadd.f32 %v132_v21, %v99_v14  ;;  %v112_v28 = vadd.f32 %v111_v24, %v80_v18  ;;  %vm201_vm5 = vcmask 1024  }
  0x2a   :  { %v142_v38 = vand.u32 127, %v141_v37  ;;  %v144_v41 = vshrl.u32 %v141_v37, 7 }
  0x2b   :  { %v134_v29 = vadd.f32 %v133_v25, %v100_v20  ;;  %v113_v31 = vadd.f32 %v112_v28, %v81_v23 }
  0x2c   :  { %v147_v40 = vadd.s32 4294967288, %v142_v38  ;;  %v145_v45 = vsub.s32 %v142_v38, %v144_v41 }
  0x2d   :  { %135 = vadd.xlane.f32.xlu1 %v134_v29  ;;  %v114_v33 = vadd.f32 %v113_v31, %v82_v27 }
  0x2e   :  { %v150_v42 = vsub.s32 %v147_v40, %v144_v41 }
  0x2f   :  { %v115_v34 = vadd.f32 %v114_v33, %v83_v30  ;;  %v28_v52 = vld [vmem:[#allocation2] sm:$0x3] }
  0x31   :  { %v116_v35 = vadd.f32 %v115_v34, %v84_v32 }
  0x33   :  { %117 = vadd.xlane.f32.xlu0 %v116_v35 }
  0xb2   :  { %v127_v39 = vpop.xlane.xlu1 %126 }
  0xb3   :  { %v157_v47 = vrot.slane %v127_v39, %v145_v45 }
  0xb5   :  { %v109_v43 = vpop.xlane.xlu0 %108 }
  0xb6   :  { %v146_v49 = vrot.slane %v109_v43, %v145_v45 }
  0xba   :  { %v136_v44 = vpop.xlane.xlu1 %135 }
  0xbb   :  { %v161_v46 = vrot.slane %v136_v44, %v150_v42 }
  0xbd   :  { %v162_v50 = vsel %vm152_vm1, %v161_v46, %v157_v47 }
  0xc0   :  { %v118_v48 = vpop.xlane.xlu0 %117 }
  0xc1   :  { %v151_v51 = vrot.slane %v118_v48, %v150_v42 }
  0xc3   :  { %v153_v53 = vsel %vm152_vm1, %v151_v51, %v146_v49 }
  0xc4   :  { %v164_v54 = vsel %vm163_vm2, %v162_v50, %v153_v53 }
  0xc5   :  { %v166_v55 = vadd.f32 %v164_v54, %v28_v52 }
  0xc7   :  { %168 = vst.msk [vmem:[#allocation2] sm:$0x3] %vm26_vm0, %v166_v55 }
  0xce   :  { %v172_v56 = vld [vmem:[#allocation2] sm:$0x3] }
  0xcf   :  { %v173_v57 = vsel %vm26_vm0, %v172_v56, -inf  ;;  %v193_v63 = vand.u32 2147483647, %v172_v56 }
  0xd0   :  { %174 = vmax.xlane.f32.xlu0 %v173_v57 }
  0xd1   :  { %v194_v0 = vsel %vm26_vm0, %v193_v63, -inf }
 0x15d   :  { %v175_v58 = vpop.xlane.xlu0 %174 }
 0x15e   :  { %vm176_vm3 = vcmp.eq.f32.partialorder %v172_v56, %v175_v58 }
 0x15f   :  { %v177_v59 = vsel %vm176_vm3, %v142_v38, 16 }
 0x160   :  { %v178_v60 = vsel %vm26_vm0, %v177_v59, 2147483647 }
 0x161   :  { %v180_v61 = vshra.s32 %v178_v60, 16  ;;  %v179_v1 = vand.u32 65535, %v178_v60 }
 0x163   :  { %v182_v62 = vcvt.s32.f32 %v180_v61  ;;  %v181_v3 = vcvt.s32.f32 %v179_v1 }
 0x165   :  { %183 = vmin.xlane.f32.xlu1 %v182_v62 }
 0x169   :  { %195 = vmax.xlane.f32.xlu1 %v194_v0 }
 0x1f2   :  { %v184_v2 = vpop.xlane.xlu1 %183 }
 0x1f3   :  { %vm185_vm4 = vcmp.eq.f32.partialorder %v182_v62, %v184_v2  ;;  %v190_v5 = vcvt.f32.s32 %v184_v2 }
 0x1f4   :  { %v186_v4 = vsel %vm185_vm4, %v181_v3, inf }
 0x1f5   :  { %187 = vmin.xlane.f32.xlu0 %v186_v4  ;;  %v191_v7 = vshll.u32 %v190_v5, 16 }
 0x1f6   :  { %v196_v10 = vpop.xlane.xlu1 %195 }
 0x1f7   :  { %vm197_vm6 = vcmp.gt.f32.partialorder %v196_v10, 0.0 }
 0x282   :  { %v188_v6 = vpop.xlane.xlu0 %187 }
 0x283   :  { %v189_v8 = vcvt.f32.s32 %v188_v6 }
 0x285   :  { %v192_v9 = vadd.s32 %v191_v7, %v189_v8 }
 0x287   :  { %v198_v11 = vcvt.s32.f32 %v192_v9 }
 0x289   :  { %v199_v12 = vadd.f32 1.0, %v198_v11 }
 0x28b   :  { %v200_v13 = vsel %vm197_vm6, %v199_v12, 0.0 }
 0x28c   :  { %202 = vst.msk [vmem:[%s271_s1] sm:$0x3] %vm201_vm5, %v200_v13 }
 0x28d   :  { %207 = vsyncpa [#allocation4], 1 }

</bundles_post_ra>
